<compile_context>
chip_gen: v7x
topology: tpu7x:2x2x1
jax: 0.10.0
libtpu: 0.0.40
codegen_flags: <defaults>
</compile_context>

<pallas_src>
import jax
import jax.numpy as jnp
from jax.experimental import pallas as pl
from jax.experimental.pallas import tpu as pltpu

D_INPUT = 28 * 28            # 784
N_CLASSES = 10
D_IN = D_INPUT + N_CLASSES   # 794
D_HIDDEN = 512
D_OUT = 1

_TB_MAX = 2048               # batch-tile cap (rows per grid step)
_SUB_M = 256                 # in-kernel M-sub-tile for MXU/epilogue overlap


def _round_up(n, m):
    return (n + m - 1) // m * m


def _tile_rows(B):
    """Pick the per-grid-step batch tile.

    - >= 2 grid steps when B > 8 (v7x megacore sharding + x-DMA double-buffering)
    - <= _TB_MAX rows/step, multiple of 8 sublanes
    - multiple of _SUB_M when larger than one sub-tile, so the in-kernel unroll divides evenly
    - minimizes padded/partial-block waste (tb ~ cdiv(B, steps), not a fixed power of two)
    """
    if B < 8:
        return B                                   # single full-array block (== full sublane dim)
    min_steps = 2 if B > 8 else 1
    steps = max(min_steps, pl.cdiv(B, _TB_MAX))
    tb = _round_up(pl.cdiv(B, steps), 8)
    if tb > _SUB_M:
        tb = _round_up(tb, _SUB_M)
    return min(tb, _TB_MAX)


def _discriminator_kernel(x_ref, w1_ref, b1_ref, w2_ref, b2_ref, o_ref):
    """One (tb, 794) batch tile of: Linear -> LeakyReLU(0.2) -> [Dropout=id] -> Linear -> sigmoid."""
    tb = x_ref.shape[0]
    sub = min(tb, _SUB_M)
    n_sub = tb // sub                      # exact by construction in the wrapper
    b1 = b1_ref[...]                       # (1, 512) f32
    w2 = w2_ref[...]                       # (1, 512) f32
    b2 = b2_ref[0]                         # scalar f32 (SMEM)

    # Unrolled M-sub-tiling: the LLO scheduler overlaps the next sub-tile's MXU matmul with the
    # previous sub-tile's VPU/XLU epilogue (they use different VLIW slots).
    for j in range(n_sub):
        lo = j * sub
        # bf16 cast happens in VMEM; x is DMA'd once in its native dtype (no HBM pad/copy pass).
        xj = x_ref[lo:lo + sub, :].astype(jnp.bfloat16)                           # (sub, 794)
        h = jnp.dot(xj, w1_ref[...], preferred_element_type=jnp.float32)          # (sub, 512) f32
        h = h + b1
        h = jnp.maximum(h, 0.2 * h)                                               # LeakyReLU(0.2)
        # Dropout(0.3): identity (eval mode)
        # Linear(512->1): VPU multiply + lane reduce (MXU stays free for the next sub-tile)
        logits = jnp.sum(h * w2, axis=-1, keepdims=True) + b2                     # (sub, 1) f32
        o_ref[lo:lo + sub, :] = jax.nn.sigmoid(logits).astype(o_ref.dtype)


def prepare_params(w1, b1, w2, b2):
    """One-time parameter prep (hoisted out of the per-call path; reuse across forward calls).

    w1: (794, 512), b1: (512,), w2: (512,), b2: ()  — weights stored (in, out)."""
    return (w1.astype(jnp.bfloat16),                       # MXU operand
            b1.reshape(1, D_HIDDEN).astype(jnp.float32),
            w2.reshape(1, D_HIDDEN).astype(jnp.float32),   # second linear stays f32 (VPU reduce)
            b2.reshape(1).astype(jnp.float32))             # true scalar, lives in SMEM


def discriminator_forward(x, params):
    """x: (B, 794) float array.  params: output of prepare_params.  Returns (B, 1) f32 probs."""
    w1, b1, w2, b2 = params
    B = x.shape[0]
    assert x.shape == (B, D_IN)

    tb = _tile_rows(B)
    grid = (pl.cdiv(B, tb),)               # partial last block handled by Pallas boundary masking

    cost = pl.CostEstimate(
        flops=2 * B * D_IN * D_HIDDEN + 4 * B * D_HIDDEN,
        transcendentals=B,
        bytes_accessed=(x.size * x.dtype.itemsize + w1.size * 2
                        + (b1.size + w2.size + b2.size) * 4 + B * D_OUT * 4),
    )

    return pl.pallas_call(
        _discriminator_kernel,
        out_shape=jax.ShapeDtypeStruct((B, D_OUT), jnp.float32),
        grid=grid,
        in_specs=[
            pl.BlockSpec((tb, D_IN), lambda i: (i, 0)),           # x: pipelined over batch tiles
            pl.BlockSpec((D_IN, D_HIDDEN), lambda i: (0, 0)),     # w1 (bf16): resident in VMEM
            pl.BlockSpec((1, D_HIDDEN), lambda i: (0, 0)),        # b1: resident
            pl.BlockSpec((1, D_HIDDEN), lambda i: (0, 0)),        # w2: resident
            pl.BlockSpec(memory_space=pltpu.MemorySpace.SMEM),    # b2: scalar in SMEM
        ],
        out_specs=pl.BlockSpec((tb, D_OUT), lambda i: (i, 0)),
        compiler_params=pltpu.CompilerParams(
            dimension_semantics=("parallel",),      # independent batch rows -> both TCs on v7x
            vmem_limit_bytes=32 * 1024 * 1024,      # room for 2048-row f32 x tiles on every gen
        ),
        cost_estimate=cost,
    )(x, w1, b1, w2, b2)


def init_params(key):
    """Mimics PyTorch nn.Linear default init: U(-1/sqrt(fan_in), 1/sqrt(fan_in)).
    Weights stored as (in, out) — transposed relative to torch's (out, in)."""
    k1, k2, k3, k4 = jax.random.split(key, 4)
    bound1 = 1.0 / jnp.sqrt(D_IN)
    bound2 = 1.0 / jnp.sqrt(D_HIDDEN)
    w1 = jax.random.uniform(k1, (D_IN, D_HIDDEN), jnp.float32, -bound1, bound1)
    b1 = jax.random.uniform(k2, (D_HIDDEN,), jnp.float32, -bound1, bound1)
    w2 = jax.random.uniform(k3, (D_HIDDEN,), jnp.float32, -bound2, bound2)
    b2 = jax.random.uniform(k4, (), jnp.float32, -bound2, bound2)
    return w1, b1, w2, b2


def _reference_forward(x, params):
    """Pure-JAX reference with the same numerics (bf16 matmul operands, f32 accumulation)."""
    w1, b1, w2, b2 = params
    h = jnp.dot(x.astype(jnp.bfloat16), w1, preferred_element_type=jnp.float32) + b1
    h = jnp.maximum(h, 0.2 * h)
    logits = jnp.sum(h * w2, axis=-1, keepdims=True) + b2[0]
    return jax.nn.sigmoid(logits)


if __name__ == "__main__":
    key = jax.random.PRNGKey(0)
    k_params, k_x = jax.random.split(key)

    params = prepare_params(*init_params(k_params))   # one-time weight prep, reused below

    # Primary case: small batch of "flattened image + one-hot class" vectors, (B, 794).
    B = 4
    x = jax.random.normal(k_x, (B, D_IN), dtype=jnp.float32)
    out = jax.block_until_ready(discriminator_forward(x, params))
    ref = _reference_forward(x, params)
    assert out.shape == (B, 1), out.shape
    assert jnp.allclose(out, ref, atol=1e-3, rtol=1e-3), (
        "mismatch vs JAX reference: max abs diff "
        f"{float(jnp.max(jnp.abs(out - ref)))}")

    # Secondary case: exercises a multi-step grid (megacore/pipelined path) with a partial
    # final batch block (B not a multiple of the tile) — no padding is materialized.
    B2 = 20
    x2 = jax.random.normal(jax.random.PRNGKey(1), (B2, D_IN), dtype=jnp.float32)
    out2 = jax.block_until_ready(discriminator_forward(x2, params))
    ref2 = _reference_forward(x2, params)
    assert out2.shape == (B2, 1), out2.shape
    assert jnp.allclose(out2, ref2, atol=1e-3, rtol=1e-3), (
        "mismatch vs JAX reference (multi-tile): max abs diff "
        f"{float(jnp.max(jnp.abs(out2 - ref2)))}")

    print("KERNEL_OK")
</pallas_src>

<mosaic_0001>
module attributes {stable_mosaic.version = 11 : i64} {
  func.func @_discriminator_kernel(%arg0: i32, %arg1: memref<4x794xf32, #tpu.memory_space<vmem>>, %arg2: memref<794x512xbf16, #tpu.memory_space<vmem>>, %arg3: memref<1x512xf32, #tpu.memory_space<vmem>>, %arg4: memref<1x512xf32, #tpu.memory_space<vmem>>, %arg5: memref<1xf32, #tpu.memory_space<smem>>, %arg6: memref<4x1xf32, #tpu.memory_space<vmem>>) attributes {dimension_semantics = [#tpu.dimension_semantics<parallel>], iteration_bounds = array<i64: 1>, scalar_prefetch = 0 : i64, scratch_operands = 0 : i64, tpu.core_type = #tpu.core_type<tc>, window_params = [{transform_indices = @transform_0, window_bounds = array<i64: 4, 794>}, {pipeline_mode = #tpu.pipeline_mode<synchronous>, transform_indices = @transform_1, window_bounds = array<i64: 794, 512>}, {pipeline_mode = #tpu.pipeline_mode<synchronous>, transform_indices = @transform_2, window_bounds = array<i64: 1, 512>}, {pipeline_mode = #tpu.pipeline_mode<synchronous>, transform_indices = @transform_3, window_bounds = array<i64: 1, 512>}, {transform_indices = @transform_4, window_bounds = array<i64: 1>}, {transform_indices = @transform_5, window_bounds = array<i64: 4, 1>}]} {
    %c0 = arith.constant 0 : index
    %c0_0 = arith.constant 0 : index
    %0 = vector.load %arg3[%c0, %c0_0] : memref<1x512xf32, #tpu.memory_space<vmem>>, vector<1x512xf32>
    %c0_1 = arith.constant 0 : index
    %c0_2 = arith.constant 0 : index
    %1 = vector.load %arg4[%c0_1, %c0_2] : memref<1x512xf32, #tpu.memory_space<vmem>>, vector<1x512xf32>
    %c0_3 = arith.constant 0 : index
    %2 = memref.load %arg5[%c0_3] : memref<1xf32, #tpu.memory_space<smem>>
    %c0_4 = arith.constant 0 : index
    %c0_5 = arith.constant 0 : index
    %3 = vector.load %arg1[%c0_4, %c0_5] : memref<4x794xf32, #tpu.memory_space<vmem>>, vector<4x794xf32>
    %4 = arith.truncf %3 : vector<4x794xf32> to vector<4x794xbf16>
    %c0_6 = arith.constant 0 : index
    %c0_7 = arith.constant 0 : index
    %5 = vector.load %arg2[%c0_6, %c0_7] : memref<794x512xbf16, #tpu.memory_space<vmem>>, vector<794x512xbf16>
    %cst = arith.constant dense<0.000000e+00> : vector<4x512xf32>
    %6 = tpu.matmul %4, %5, %cst {dimension_numbers = #tpu.dot_dimension_numbers<[1], [0], [0], [1], [0, 0, 1, 1], [], []>} : vector<4x794xbf16>, vector<794x512xbf16>, vector<4x512xf32> -> vector<4x512xf32>
    %7 = vector.broadcast %0 : vector<1x512xf32> to vector<4x512xf32>
    %8 = arith.addf %6, %7 : vector<4x512xf32>
    %cst_8 = arith.constant 2.000000e-01 : f32
    %9 = vector.broadcast %cst_8 : f32 to vector<4x512xf32>
    %10 = arith.mulf %9, %8 : vector<4x512xf32>
    %11 = arith.maximumf %8, %10 : vector<4x512xf32>
    %12 = vector.broadcast %1 : vector<1x512xf32> to vector<4x512xf32>
    %13 = arith.mulf %11, %12 : vector<4x512xf32>
    %cst_9 = arith.constant dense<0.000000e+00> : vector<4xf32>
    %14 = vector.multi_reduction <add>, %13, %cst_9 [1] : vector<4x512xf32> to vector<4xf32>
    %15 = vector.shape_cast %14 : vector<4xf32> to vector<4x1xf32>
    %16 = vector.broadcast %2 : f32 to vector<4x1xf32>
    %17 = arith.addf %15, %16 : vector<4x1xf32>
    %18 = arith.negf %17 : vector<4x1xf32>
    %19 = math.exp %18 : vector<4x1xf32>
    %cst_10 = arith.constant 1.000000e+00 : f32
    %20 = vector.broadcast %cst_10 : f32 to vector<4x1xf32>
    %21 = arith.addf %20, %19 : vector<4x1xf32>
    %22 = arith.divf %20, %21 : vector<4x1xf32>
    %c0_11 = arith.constant 0 : index
    %c0_12 = arith.constant 0 : index
    %23 = vector.load %arg6[%c0_11, %c0_12] : memref<4x1xf32, #tpu.memory_space<vmem>>, vector<4x1xf32>
    tpu.vector_store %arg6[%c0_11, %c0_12], %22 {strides = array<i32>} : memref<4x1xf32, #tpu.memory_space<vmem>>, vector<4x1xf32>,
    return
  }
  func.func @transform_0(%arg0: i32) -> (i32, i32) {
    %c0_i32 = arith.constant 0 : i32
    %c0_i32_0 = arith.constant 0 : i32
    return %arg0, %c0_i32 : i32, i32
  }
  func.func @transform_1(%arg0: i32) -> (i32, i32) {
    %c0_i32 = arith.constant 0 : i32
    %c0_i32_0 = arith.constant 0 : i32
    %c0_i32_1 = arith.constant 0 : i32
    return %c0_i32, %c0_i32_0 : i32, i32
  }
  func.func @transform_2(%arg0: i32) -> (i32, i32) {
    %c0_i32 = arith.constant 0 : i32
    %c0_i32_0 = arith.constant 0 : i32
    %c0_i32_1 = arith.constant 0 : i32
    return %c0_i32, %c0_i32_0 : i32, i32
  }
  func.func @transform_3(%arg0: i32) -> (i32, i32) {
    %c0_i32 = arith.constant 0 : i32
    %c0_i32_0 = arith.constant 0 : i32
    %c0_i32_1 = arith.constant 0 : i32
    return %c0_i32, %c0_i32_0 : i32, i32
  }
  func.func @transform_4(%arg0: i32) -> i32 {
    %c0_i32 = arith.constant 0 : i32
    %c0_i32_0 = arith.constant 0 : i32
    return %c0_i32 : i32
  }
  func.func @transform_5(%arg0: i32) -> (i32, i32) {
    %c0_i32 = arith.constant 0 : i32
    %c0_i32_0 = arith.constant 0 : i32
    return %arg0, %c0_i32 : i32, i32
  }
}

</mosaic_0001>

<bundles_post_ra>
// kernel: tpu_custom_call.1
= control target key start
LH: loop header
LB: loop body
LE: loop exit
PB: predicated region body
PF: predicated region fallthrough
CT: control target
= control target key end

     0   :  { %11 = vsyncpa [#allocation4], 0  ;;  %s2375_s0 = inlined_call_operand.hbm [shape: f32[4,794], index: 0, kind: input, shape index: {}]   ;;  %s2376_s1 = inlined_call_operand.hbm [shape: bf16[794,512], index: 1, kind: input, shape index: {}]   ;;  %s2377_s2 = inlined_call_operand.vmem [shape: f32[1,512], index: 2, kind: input, shape index: {}]   ;;  %s2378_s3 = inlined_call_operand.vmem [shape: f32[1,512], index: 3, kind: input, shape index: {}]   ;;  %s2379_s4 = inlined_call_operand.<no memory space> [shape: f32[1], index: 4, kind: input, shape index: {}]   ;;  %s2380_s5 = inlined_call_operand.vmem [shape: f32[4,1], index: 5, kind: output, shape index: {}]  }
   0x1   :  { %12 = vsyncpa [#allocation6], 0  ;;  %s2285_s18 = smov [#allocation3]   ;;  %s2286_s20 = smov [#allocation5]  }
   0x2   :  { %s19_s19 = sshll.u32 %s2285_s18, 4  ;;  %s28_s21 = sshll.u32 %s2286_s20, 4  ;;  %s20_s19 = int_to_ptr.vmem [resolvable:$true] %s19_s19  ;;  %s2320_s21 = int_to_ptr.vmem [resolvable:$true] %s28_s21 }
   0x3   :  { %s2237_s24 = scalar_lea.hbm %s2375_s0, 448 }
   0x4   :  { %p2238_p0 = scmp.ne.s32.totalorder %s2375_s0, %s2237_s24  ;;  %p2241_p1 = scmp.lt.u32.totalorder %s2237_s24, %s2375_s0 }
   0x6   :  { %p2243_p2 = pnand %p2241_p1, %p2238_p0 }
   0x8   :  { %2246 = shalt.err (!%p2243_p2)
}
   0x9   :  { %s2247_s29 = scalar_lea.vmem %s20_s19, 448  ;;  %p2252_p4 = scmp.lt.s32.totalorder %s20_s19, %s20_s19 }
   0xa   :  { %p2248_p3 = scmp.ne.s32.totalorder %s20_s19, %s2247_s29  ;;  %p2253_p5 = scmp.lt.s32.totalorder %s2247_s29, %s2247_s29 }
   0xc   :  { %p2254_p6 = por %p2253_p5, %p2252_p4 }
   0xe   :  { %p2255_p7 = pnand %p2254_p6, %p2248_p3 }
  0x10   :  { %2258 = shalt.err (!%p2255_p7)
}
  0x11   :  { %22 = dma.hbm_to_vmem [thread:$0]  %s2375_s0, 448, %s20_s19, [#allocation4]  }
  0x12   :  { %s2259_s9 = scalar_lea.hbm %s2376_s1, 25600 }
  0x13   :  { %p2260_p8 = scmp.ne.s32.totalorder %s2376_s1, %s2259_s9  ;;  %p2263_p9 = scmp.lt.u32.totalorder %s2259_s9, %s2376_s1 }
  0x15   :  { %p2265_p10 = pnand %p2263_p9, %p2260_p8 }
  0x17   :  { %2268 = shalt.err (!%p2265_p10)
}
  0x18   :  { %s2269_s14 = scalar_lea.vmem %s2320_s21, 25600  ;;  %p2274_p12 = scmp.lt.s32.totalorder %s2320_s21, %s2320_s21 }
  0x19   :  { %p2270_p11 = scmp.ne.s32.totalorder %s2320_s21, %s2269_s14  ;;  %p2275_p13 = scmp.lt.s32.totalorder %s2269_s14, %s2269_s14 }
  0x1b   :  { %p2276_p0 = por %p2275_p13, %p2274_p12 }
  0x1d   :  { %p2277_p1 = pnand %p2276_p0, %p2270_p11 }
  0x1f   :  { %2280 = shalt.err (!%p2277_p1)
}
  0x20   :  { %s2287_s0 = smov 256   ;;  %s2288_s15 = smov 16  }
  0x21   :  { %34 = dma.hbm_to_vmem [thread:$0]  %s2376_s1, 25600, %s2320_s21, [#allocation6], %s2287_s0, %s2287_s0, %s2288_s15  }
  0x22   :  { %2281 = dma.done.wait [#allocation4], 448  }
  0x23   :  { %2282 = vsyncadd [#allocation4], 4294966848 }
  0x24   :  { %2283 = dma.done.wait [#allocation6], 25600  }
  0x25   :  { %2284 = vsyncadd [#allocation6], 4294941696  ;;  %v1930_v0 = vld [vmem:[#allocation5 + $0x4] ss:$16 sps:$4 sm:$0xff]   ;;  %v1932_v1 = vld [vmem:[#allocation5 + $0xc] ss:$16 sps:$4 sm:$0xff]  }
  0x26   :  { %1305 = vmatprep.subr.bf16.mxu0 %v1930_v0  ;;  %v1934_v2 = vld [vmem:[#allocation5] ss:$16 sps:$4 sm:$0xff]   ;;  %v1935_v3 = vld [vmem:[#allocation5 + $0x8] ss:$16 sps:$4 sm:$0xff]   ;;  %1469 = vmatprep.subr.bf16.mxu1 %v1932_v1  ;;  %v1936_v4 = vld [vmem:[#allocation5 + $0x24] ss:$16 sps:$4 sm:$0xff]  }
  0x27   :  { %1306 = vmatpush1.bf16.msra.mxu0 %v1934_v2  ;;  %1470 = vmatpush1.bf16.msra.mxu1 %v1935_v3  ;;  %v1938_v5 = vld [vmem:[#allocation5 + $0x2c] ss:$16 sps:$4 sm:$0xff]   ;;  %v1940_v6 = vld [vmem:[#allocation5 + $0x20] ss:$16 sps:$4 sm:$0xff]   ;;  %v1941_v7 = vld [vmem:[#allocation5 + $0x28] ss:$16 sps:$4 sm:$0xff]  }
  0x28   :  { %1307 = vmatprep.subr.bf16.mxu0 %v1936_v4  ;;  %1471 = vmatprep.subr.bf16.mxu1 %v1938_v5  ;;  %v1942_v8 = vld [vmem:[#allocation5 + $0x44] ss:$16 sps:$4 sm:$0xff]   ;;  %v1944_v9 = vld [vmem:[#allocation5 + $0x4c] ss:$16 sps:$4 sm:$0xff]   ;;  %v1946_v10 = vld [vmem:[#allocation5 + $0x40] ss:$16 sps:$4 sm:$0xff]  }
  0x29   :  { %v1947_v11 = vld [vmem:[#allocation5 + $0x48] ss:$16 sps:$4 sm:$0xff]   ;;  %v1948_v12 = vld [vmem:[#allocation5 + $0x64] ss:$16 sps:$4 sm:$0xff]   ;;  %v1950_v13 = vld [vmem:[#allocation5 + $0x6c] ss:$16 sps:$4 sm:$0xff]  }
  0x2a   :  { %v1952_v14 = vld [vmem:[#allocation5 + $0x60] ss:$16 sps:$4 sm:$0xff]   ;;  %v1953_v15 = vld [vmem:[#allocation5 + $0x68] ss:$16 sps:$4 sm:$0xff]   ;;  %v1954_v16 = vld [vmem:[#allocation5 + $0x84] ss:$16 sps:$4 sm:$0xff]  }
  0x2b   :  { %1308 = vmatpush1.bf16.msra.mxu0 %v1940_v6  ;;  %1472 = vmatpush1.bf16.msra.mxu1 %v1941_v7  ;;  %v1956_v17 = vld [vmem:[#allocation5 + $0x8c] ss:$16 sps:$4 sm:$0xff]   ;;  %v1958_v18 = vld [vmem:[#allocation5 + $0x80] ss:$16 sps:$4 sm:$0xff]   ;;  %v1959_v19 = vld [vmem:[#allocation5 + $0x88] ss:$16 sps:$4 sm:$0xff]  }
  0x2c   :  { %1309 = vmatprep.subr.bf16.mxu0 %v1942_v8  ;;  %1473 = vmatprep.subr.bf16.mxu1 %v1944_v9  ;;  %v1960_v20 = vld [vmem:[#allocation5 + $0xa4] ss:$16 sps:$4 sm:$0xff]   ;;  %v1962_v21 = vld [vmem:[#allocation5 + $0xac] ss:$16 sps:$4 sm:$0xff]   ;;  %v1964_v22 = vld [vmem:[#allocation5 + $0xa0] ss:$16 sps:$4 sm:$0xff]  }
  0x2d   :  { %v1965_v23 = vld [vmem:[#allocation5 + $0xa8] ss:$16 sps:$4 sm:$0xff]   ;;  %v1966_v24 = vld [vmem:[#allocation5 + $0xc4] ss:$16 sps:$4 sm:$0xff]   ;;  %v1968_v25 = vld [vmem:[#allocation5 + $0xcc] ss:$16 sps:$4 sm:$0xff]  }
  0x2e   :  { %v1970_v26 = vld [vmem:[#allocation5 + $0xc0] ss:$16 sps:$4 sm:$0xff]   ;;  %v1971_v27 = vld [vmem:[#allocation5 + $0xc8] ss:$16 sps:$4 sm:$0xff]   ;;  %v1972_v28 = vld [vmem:[#allocation5 + $0xe4] ss:$16 sps:$4 sm:$0xff]  }
  0x2f   :  { %1310 = vmatpush1.bf16.msra.mxu0 %v1946_v10  ;;  %1474 = vmatpush1.bf16.msra.mxu1 %v1947_v11  ;;  %v1974_v29 = vld [vmem:[#allocation5 + $0xec] ss:$16 sps:$4 sm:$0xff]   ;;  %v1976_v30 = vld [vmem:[#allocation5 + $0xe0] ss:$16 sps:$4 sm:$0xff]   ;;  %v1977_v31 = vld [vmem:[#allocation5 + $0xe8] ss:$16 sps:$4 sm:$0xff]  }
  0x30   :  { %1311 = vmatprep.subr.bf16.mxu0 %v1948_v12  ;;  %1475 = vmatprep.subr.bf16.mxu1 %v1950_v13  ;;  %v1978_v32 = vld [vmem:[#allocation5 + $0x104] ss:$16 sps:$4 sm:$0xff]   ;;  %v1980_v33 = vld [vmem:[#allocation5 + $0x10c] ss:$16 sps:$4 sm:$0xff]   ;;  %v1982_v34 = vld [vmem:[#allocation5 + $0x100] ss:$16 sps:$4 sm:$0xff]  }
  0x31   :  { %v1983_v35 = vld [vmem:[#allocation5 + $0x108] ss:$16 sps:$4 sm:$0xff]   ;;  %v1984_v36 = vld [vmem:[#allocation5 + $0x124] ss:$16 sps:$4 sm:$0xff]   ;;  %v1986_v37 = vld [vmem:[#allocation5 + $0x12c] ss:$16 sps:$4 sm:$0xff]  }
  0x32   :  { %v1988_v38 = vld [vmem:[#allocation5 + $0x120] ss:$16 sps:$4 sm:$0xff]   ;;  %v1989_v39 = vld [vmem:[#allocation5 + $0x128] ss:$16 sps:$4 sm:$0xff]   ;;  %v1990_v40 = vld [vmem:[#allocation5 + $0x144] ss:$16 sps:$4 sm:$0xff]  }
  0x33   :  { %1312 = vmatpush1.bf16.msra.mxu0 %v1952_v14  ;;  %1476 = vmatpush1.bf16.msra.mxu1 %v1953_v15  ;;  %v1992_v41 = vld [vmem:[#allocation5 + $0x14c] ss:$16 sps:$4 sm:$0xff]   ;;  %v1994_v42 = vld [vmem:[#allocation5 + $0x140] ss:$16 sps:$4 sm:$0xff]   ;;  %v1995_v43 = vld [vmem:[#allocation5 + $0x148] ss:$16 sps:$4 sm:$0xff]  }
  0x34   :  { %1313 = vmatprep.subr.bf16.mxu0 %v1954_v16  ;;  %1477 = vmatprep.subr.bf16.mxu1 %v1956_v17  ;;  %v1996_v44 = vld [vmem:[#allocation5 + $0x164] ss:$16 sps:$4 sm:$0xff]   ;;  %v1998_v45 = vld [vmem:[#allocation5 + $0x16c] ss:$16 sps:$4 sm:$0xff]   ;;  %v2000_v47 = vld [vmem:[#allocation5 + $0x160] ss:$16 sps:$4 sm:$0xff]  }
  0x35   :  { %v51_v46 = vld [vmem:[#allocation3] sm:$0xff]  ;;  %v2004_v51 = vld [vmem:[#allocation5 + $0x18c] ss:$16 sps:$4 sm:$0xff]   ;;  %v2006_v53 = vld [vmem:[#allocation5 + $0x180] ss:$16 sps:$4 sm:$0xff]   ;;  %vm1292_vm0 = vcmask 1044480  }
  0x36   :  { %v58_v48 = vcombine.high %v51_v46, %v51_v46  ;;  %v2001_v49 = vld [vmem:[#allocation5 + $0x168] ss:$16 sps:$4 sm:$0xff]   ;;  %v2002_v50 = vld [vmem:[#allocation5 + $0x184] ss:$16 sps:$4 sm:$0xff]   ;;  %v2010_v56 = vld [vmem:[#allocation5 + $0x1ac] ss:$16 sps:$4 sm:$0xff]   ;;  %v64_v6 = vpack.c.bf16 %v51_v46, %v51_v46 }
  0x37   :  { %1314 = vmatpush1.bf16.msra.mxu0 %v1958_v18  ;;  %1478 = vmatpush1.bf16.msra.mxu1 %v1959_v19  ;;  %v2007_v54 = vld [vmem:[#allocation5 + $0x188] ss:$16 sps:$4 sm:$0xff]   ;;  %v2008_v55 = vld [vmem:[#allocation5 + $0x1a4] ss:$16 sps:$4 sm:$0xff]   ;;  %v2012_v57 = vld [vmem:[#allocation5 + $0x1a0] ss:$16 sps:$4 sm:$0xff]  }
  0x38   :  { %1315 = vmatprep.subr.bf16.mxu0 %v1960_v20  ;;  %1479 = vmatprep.subr.bf16.mxu1 %v1962_v21  ;;  %v65_v52 = vpack.c.bf16 %v58_v48, %v58_v48  ;;  %v2013_v58 = vld [vmem:[#allocation5 + $0x1a8] ss:$16 sps:$4 sm:$0xff]   ;;  %v2014_v59 = vld [vmem:[#allocation5 + $0x1c4] ss:$16 sps:$4 sm:$0xff]   ;;  %v2016_v60 = vld [vmem:[#allocation5 + $0x1cc] ss:$16 sps:$4 sm:$0xff]  }
  0x39   :  { %v2018_v61 = vld [vmem:[#allocation5 + $0x1c0] ss:$16 sps:$4 sm:$0xff]   ;;  %v2019_v62 = vld [vmem:[#allocation5 + $0x1c8] ss:$16 sps:$4 sm:$0xff]   ;;  %v2020_v63 = vld [vmem:[#allocation5 + $0x1e4] ss:$16 sps:$4 sm:$0xff]  }
  0x3a   :  { %1337 = vmatprep.mubr.bf16.mxu0 %v65_v52  ;;  %1501 = vmatprep.mubr.bf16.mxu1 %v65_v52  ;;  %v2022_v0 = vld [vmem:[#allocation5 + $0x1ec] ss:$16 sps:$4 sm:$0xff]   ;;  %v2024_v1 = vld [vmem:[#allocation5 + $0x1e0] ss:$16 sps:$4 sm:$0xff]   ;;  %v2025_v2 = vld [vmem:[#allocation5 + $0x1e8] ss:$16 sps:$4 sm:$0xff]  }
  0x3b   :  { %1316 = vmatpush1.bf16.msra.mxu0 %v1964_v22  ;;  %1480 = vmatpush1.bf16.msra.mxu1 %v1965_v23  ;;  %v2029_v3 = vld [vmem:[#allocation5 + $0x204] ss:$16 sps:$4 sm:$0xff]   ;;  %v2032_v4 = vld [vmem:[#allocation5 + $0x20c] ss:$16 sps:$4 sm:$0xff]   ;;  %v2027_v5 = vld [vmem:[#allocation5 + $0x200] ss:$16 sps:$4 sm:$0xff]  }
  0x3c   :  { %1317 = vmatprep.subr.bf16.mxu0 %v1966_v24  ;;  %1481 = vmatprep.subr.bf16.mxu1 %v1968_v25  ;;  %v2030_v7 = vld [vmem:[#allocation5 + $0x208] ss:$16 sps:$4 sm:$0xff]   ;;  %v2035_v8 = vld [vmem:[#allocation5 + $0x224] ss:$16 sps:$4 sm:$0xff]   ;;  %v2038_v9 = vld [vmem:[#allocation5 + $0x22c] ss:$16 sps:$4 sm:$0xff]  }
  0x3d   :  { %v2033_v10 = vld [vmem:[#allocation5 + $0x220] ss:$16 sps:$4 sm:$0xff]   ;;  %v2036_v11 = vld [vmem:[#allocation5 + $0x228] ss:$16 sps:$4 sm:$0xff]   ;;  %v2041_v12 = vld [vmem:[#allocation5 + $0x244] ss:$16 sps:$4 sm:$0xff]  }
  0x3e   :  { %v2044_v13 = vld [vmem:[#allocation5 + $0x24c] ss:$16 sps:$4 sm:$0xff]   ;;  %v2039_v14 = vld [vmem:[#allocation5 + $0x240] ss:$16 sps:$4 sm:$0xff]   ;;  %v2042_v15 = vld [vmem:[#allocation5 + $0x248] ss:$16 sps:$4 sm:$0xff]  }
  0x3f   :  { %1318 = vmatpush1.bf16.msra.mxu0 %v1970_v26  ;;  %1482 = vmatpush1.bf16.msra.mxu1 %v1971_v27  ;;  %v2047_v16 = vld [vmem:[#allocation5 + $0x264] ss:$16 sps:$4 sm:$0xff]   ;;  %v2050_v17 = vld [vmem:[#allocation5 + $0x26c] ss:$16 sps:$4 sm:$0xff]   ;;  %v2045_v18 = vld [vmem:[#allocation5 + $0x260] ss:$16 sps:$4 sm:$0xff]  }
  0x40   :  { %1319 = vmatprep.subr.bf16.mxu0 %v1972_v28  ;;  %1483 = vmatprep.subr.bf16.mxu1 %v1974_v29  ;;  %v2048_v19 = vld [vmem:[#allocation5 + $0x268] ss:$16 sps:$4 sm:$0xff]   ;;  %v2053_v20 = vld [vmem:[#allocation5 + $0x284] ss:$16 sps:$4 sm:$0xff]   ;;  %v2056_v21 = vld [vmem:[#allocation5 + $0x28c] ss:$16 sps:$4 sm:$0xff]  }
  0x41   :  { %v2051_v22 = vld [vmem:[#allocation5 + $0x280] ss:$16 sps:$4 sm:$0xff]   ;;  %v2054_v23 = vld [vmem:[#allocation5 + $0x288] ss:$16 sps:$4 sm:$0xff]   ;;  %v2059_v24 = vld [vmem:[#allocation5 + $0x2a4] ss:$16 sps:$4 sm:$0xff]  }
  0x42   :  { %v2062_v25 = vld [vmem:[#allocation5 + $0x2ac] ss:$16 sps:$4 sm:$0xff]   ;;  %v2057_v26 = vld [vmem:[#allocation5 + $0x2a0] ss:$16 sps:$4 sm:$0xff]   ;;  %v2060_v27 = vld [vmem:[#allocation5 + $0x2a8] ss:$16 sps:$4 sm:$0xff]  }
  0x43   :  { %1320 = vmatpush1.bf16.msra.mxu0 %v1976_v30  ;;  %1484 = vmatpush1.bf16.msra.mxu1 %v1977_v31  ;;  %v2065_v28 = vld [vmem:[#allocation5 + $0x2c4] ss:$16 sps:$4 sm:$0xff]   ;;  %v2068_v29 = vld [vmem:[#allocation5 + $0x2cc] ss:$16 sps:$4 sm:$0xff]   ;;  %v2084_v46 = vld [vmem:[#allocation5 + $0x328] ss:$16 sps:$4 sm:$0xff]  }
  0x44   :  { %1321 = vmatprep.subr.bf16.mxu0 %v1978_v32  ;;  %1485 = vmatprep.subr.bf16.mxu1 %v1980_v33  ;;  %v2351_v30 = vld [vmem:[#allocation3 + $0x8] sm:$0xff]  ;;  %v2066_v33 = vld [vmem:[#allocation5 + $0x2c8] ss:$16 sps:$4 sm:$0xff]   ;;  %vm1288_vm1 = vcmask 211968   ;;  %vm1666_vm2 = vcmask 1043456   ;;  %vm1684_vm3 = vcmask 3072  }
  0x45   :  { %v59_v31 = vcombine.high %v2351_v30, %v2351_v30  ;;  %v2063_v32 = vld [vmem:[#allocation5 + $0x2c0] ss:$16 sps:$4 sm:$0xff]   ;;  %v2092_v48 = vld [vmem:[#allocation5 + $0x34c] ss:$16 sps:$4 sm:$0xff]  }
  0x46   :  { %v2098_v52 = vld [vmem:[#allocation5 + $0x36c] ss:$16 sps:$4 sm:$0xff]  }
  0x47   :  { %1322 = vmatpush1.bf16.msra.mxu0 %v1982_v34  ;;  %1486 = vmatpush1.bf16.msra.mxu1 %v1983_v35  ;;  %v67_v34 = vpack.c.bf16 %v59_v31, %v59_v31  ;;  %v2071_v35 = vld [vmem:[#allocation5 + $0x2e4] ss:$16 sps:$4 sm:$0xff]  }
  0x48   :  { %1323 = vmatprep.subr.bf16.mxu0 %v1984_v36  ;;  %1487 = vmatprep.subr.bf16.mxu1 %v1986_v37  ;;  %v2074_v36 = vld [vmem:[#allocation5 + $0x2ec] ss:$16 sps:$4 sm:$0xff]   ;;  %v2069_v37 = vld [vmem:[#allocation5 + $0x2e0] ss:$16 sps:$4 sm:$0xff]   ;;  %v2156_v31 = vld [vmem:[#allocation5 + $0x4a4] ss:$16 sps:$4 sm:$0xff]  }
  0x4b   :  { %1324 = vmatpush1.bf16.msra.mxu0 %v1988_v38  ;;  %1488 = vmatpush1.bf16.msra.mxu1 %v1989_v39  ;;  %v2072_v38 = vld [vmem:[#allocation5 + $0x2e8] ss:$16 sps:$4 sm:$0xff]   ;;  %v2077_v39 = vld [vmem:[#allocation5 + $0x304] ss:$16 sps:$4 sm:$0xff]  }
  0x4c   :  { %1325 = vmatprep.subr.bf16.mxu0 %v1990_v40  ;;  %1489 = vmatprep.subr.bf16.mxu1 %v1992_v41  ;;  %v2080_v40 = vld [vmem:[#allocation5 + $0x30c] ss:$16 sps:$4 sm:$0xff]   ;;  %v2075_v41 = vld [vmem:[#allocation5 + $0x300] ss:$16 sps:$4 sm:$0xff]  }
  0x4f   :  { %1326 = vmatpush1.bf16.msra.mxu0 %v1994_v42  ;;  %1490 = vmatpush1.bf16.msra.mxu1 %v1995_v43  ;;  %v2078_v42 = vld [vmem:[#allocation5 + $0x308] ss:$16 sps:$4 sm:$0xff]   ;;  %v2083_v43 = vld [vmem:[#allocation5 + $0x324] ss:$16 sps:$4 sm:$0xff]  }
  0x50   :  { %1327 = vmatprep.subr.bf16.mxu0 %v1996_v44  ;;  %1491 = vmatprep.subr.bf16.mxu1 %v1998_v45  ;;  %v2086_v44 = vld [vmem:[#allocation5 + $0x32c] ss:$16 sps:$4 sm:$0xff]   ;;  %v2081_v45 = vld [vmem:[#allocation5 + $0x320] ss:$16 sps:$4 sm:$0xff]  }
  0x53   :  { %1328 = vmatpush1.bf16.msra.mxu0 %v2000_v47  ;;  %1492 = vmatpush1.bf16.msra.mxu1 %v2001_v49  ;;  %v2089_v47 = vld [vmem:[#allocation5 + $0x344] ss:$16 sps:$4 sm:$0xff]   ;;  %v2087_v49 = vld [vmem:[#allocation5 + $0x340] ss:$16 sps:$4 sm:$0xff]  }
  0x54   :  { %1329 = vmatprep.subr.bf16.mxu0 %v2002_v50  ;;  %1493 = vmatprep.subr.bf16.mxu1 %v2004_v51  ;;  %v2090_v50 = vld [vmem:[#allocation5 + $0x348] ss:$16 sps:$4 sm:$0xff]   ;;  %v2095_v51 = vld [vmem:[#allocation5 + $0x364] ss:$16 sps:$4 sm:$0xff]  }
  0x57   :  { %1330 = vmatpush1.bf16.msra.mxu0 %v2006_v53  ;;  %1494 = vmatpush1.bf16.msra.mxu1 %v2007_v54  ;;  %v2093_v53 = vld [vmem:[#allocation5 + $0x360] ss:$16 sps:$4 sm:$0xff]   ;;  %v2096_v54 = vld [vmem:[#allocation5 + $0x368] ss:$16 sps:$4 sm:$0xff]  }
  0x58   :  { %1331 = vmatprep.subr.bf16.mxu0 %v2008_v55  ;;  %1495 = vmatprep.subr.bf16.mxu1 %v2010_v56  ;;  %v2101_v55 = vld [vmem:[#allocation5 + $0x384] ss:$16 sps:$4 sm:$0xff]   ;;  %v2104_v56 = vld [vmem:[#allocation5 + $0x38c] ss:$16 sps:$4 sm:$0xff]  }
  0x5b   :  { %1332 = vmatpush1.bf16.msra.mxu0 %v2012_v57  ;;  %1496 = vmatpush1.bf16.msra.mxu1 %v2013_v58  ;;  %v2099_v57 = vld [vmem:[#allocation5 + $0x380] ss:$16 sps:$4 sm:$0xff]   ;;  %v2102_v58 = vld [vmem:[#allocation5 + $0x388] ss:$16 sps:$4 sm:$0xff]  }
  0x5c   :  { %1333 = vmatprep.subr.bf16.mxu0 %v2014_v59  ;;  %1497 = vmatprep.subr.bf16.mxu1 %v2016_v60  ;;  %v2107_v59 = vld [vmem:[#allocation5 + $0x3a4] ss:$16 sps:$4 sm:$0xff]   ;;  %v2110_v60 = vld [vmem:[#allocation5 + $0x3ac] ss:$16 sps:$4 sm:$0xff]  }
  0x5f   :  { %1334 = vmatpush1.bf16.msra.mxu0 %v2018_v61  ;;  %1498 = vmatpush1.bf16.msra.mxu1 %v2019_v62  ;;  %v2105_v61 = vld [vmem:[#allocation5 + $0x3a0] ss:$16 sps:$4 sm:$0xff]   ;;  %v2108_v62 = vld [vmem:[#allocation5 + $0x3a8] ss:$16 sps:$4 sm:$0xff]  }
  0x60   :  { %1335 = vmatprep.subr.bf16.mxu0 %v2020_v63  ;;  %1499 = vmatprep.subr.bf16.mxu1 %v2022_v0  ;;  %v2113_v63 = vld [vmem:[#allocation5 + $0x3c4] ss:$16 sps:$4 sm:$0xff]   ;;  %v2116_v0 = vld [vmem:[#allocation5 + $0x3cc] ss:$16 sps:$4 sm:$0xff]  }
  0x63   :  { %1336 = vmatpush1.bf16.msra.mxu0 %v2024_v1  ;;  %1500 = vmatpush1.bf16.msra.mxu1 %v2025_v2  ;;  %v2111_v1 = vld [vmem:[#allocation5 + $0x3c0] ss:$16 sps:$4 sm:$0xff]   ;;  %v2114_v2 = vld [vmem:[#allocation5 + $0x3c8] ss:$16 sps:$4 sm:$0xff]  }
  0x64   :  { %1346 = vmatprep.subr.bf16.mxu0 %v2029_v3  ;;  %1510 = vmatprep.subr.bf16.mxu1 %v2032_v4  ;;  %v2119_v3 = vld [vmem:[#allocation5 + $0x3e4] ss:$16 sps:$4 sm:$0xff]   ;;  %v2122_v4 = vld [vmem:[#allocation5 + $0x3ec] ss:$16 sps:$4 sm:$0xff]  }
  0x66   :  { %1338 = vmatmul.mubr.bf16.vlgmr.msra.gmra.mrb[0].mxu0 %v64_v6  ;;  %1502 = vmatmul.mubr.bf16.vlgmr.msra.gmra.mrb[0].mxu1 %v64_v6  ;;  %v2120_v6 = vld [vmem:[#allocation5 + $0x3e8] ss:$16 sps:$4 sm:$0xff]  }
  0x67   :  { %1347 = vmatpush1.bf16.msra.mxu0 %v2027_v5  ;;  %1511 = vmatpush1.bf16.msra.mxu1 %v2030_v7  ;;  %v2117_v5 = vld [vmem:[#allocation5 + $0x3e0] ss:$16 sps:$4 sm:$0xff]   ;;  %v2126_v7 = vld [vmem:[#allocation5 + $0x404] ss:$16 sps:$4 sm:$0xff]  }
  0x68   :  { %1348 = vmatprep.subr.bf16.mxu0 %v2035_v8  ;;  %1512 = vmatprep.subr.bf16.mxu1 %v2038_v9  ;;  %v2129_v8 = vld [vmem:[#allocation5 + $0x40c] ss:$16 sps:$4 sm:$0xff]   ;;  %v66_v9 = vpack.c.bf16 %v2351_v30, %v2351_v30  ;;  %v2151_v30 = vld [vmem:[#allocation5 + $0x488] ss:$16 sps:$4 sm:$0xff]  }
  0x69   :  { %1378 = vmatprep.mubr.bf16.mxu0 %v67_v34  ;;  %1542 = vmatprep.mubr.bf16.mxu1 %v67_v34  ;;  %v2157_v34 = vld [vmem:[#allocation5 + $0x4a8] ss:$16 sps:$4 sm:$0xff]  }
  0x6b   :  { %1349 = vmatpush1.bf16.msra.mxu0 %v2033_v10  ;;  %1513 = vmatpush1.bf16.msra.mxu1 %v2036_v11  ;;  %v2124_v10 = vld [vmem:[#allocation5 + $0x400] ss:$16 sps:$4 sm:$0xff]   ;;  %v2127_v11 = vld [vmem:[#allocation5 + $0x408] ss:$16 sps:$4 sm:$0xff]  }
  0x6c   :  { %1350 = vmatprep.subr.bf16.mxu0 %v2041_v12  ;;  %1514 = vmatprep.subr.bf16.mxu1 %v2044_v13  ;;  %v2132_v12 = vld [vmem:[#allocation5 + $0x424] ss:$16 sps:$4 sm:$0xff]  }
  0x6d   :  { %v2357_v13 = vld [vmem:[#allocation3 + $0x10] sm:$0xff] }
  0x6f   :  { %1351 = vmatpush1.bf16.msra.mxu0 %v2039_v14  ;;  %1515 = vmatpush1.bf16.msra.mxu1 %v2042_v15  ;;  %v2135_v14 = vld [vmem:[#allocation5 + $0x42c] ss:$16 sps:$4 sm:$0xff]   ;;  %v60_v15 = vcombine.high %v2357_v13, %v2357_v13 }
  0x70   :  { %1352 = vmatprep.subr.bf16.mxu0 %v2047_v16  ;;  %1516 = vmatprep.subr.bf16.mxu1 %v2050_v17  ;;  %v2130_v16 = vld [vmem:[#allocation5 + $0x420] ss:$16 sps:$4 sm:$0xff]  }
  0x71   :  { %v69_v17 = vpack.c.bf16 %v60_v15, %v60_v15  ;;  %v2221_v15 = vld [vmem:[#allocation5 + $0x600] ss:$16 sps:$4 sm:$0xff]  }
  0x73   :  { %1353 = vmatpush1.bf16.msra.mxu0 %v2045_v18  ;;  %1517 = vmatpush1.bf16.msra.mxu1 %v2048_v19  ;;  %v2133_v18 = vld [vmem:[#allocation5 + $0x428] ss:$16 sps:$4 sm:$0xff]   ;;  %v2138_v19 = vld [vmem:[#allocation5 + $0x444] ss:$16 sps:$4 sm:$0xff]  }
  0x74   :  { %1354 = vmatprep.subr.bf16.mxu0 %v2053_v20  ;;  %1518 = vmatprep.subr.bf16.mxu1 %v2056_v21  ;;  %v2141_v20 = vld [vmem:[#allocation5 + $0x44c] ss:$16 sps:$4 sm:$0xff]   ;;  %v2136_v21 = vld [vmem:[#allocation5 + $0x440] ss:$16 sps:$4 sm:$0xff]  }
  0x77   :  { %1355 = vmatpush1.bf16.msra.mxu0 %v2051_v22  ;;  %1519 = vmatpush1.bf16.msra.mxu1 %v2054_v23  ;;  %v2139_v22 = vld [vmem:[#allocation5 + $0x448] ss:$16 sps:$4 sm:$0xff]   ;;  %v2144_v23 = vld [vmem:[#allocation5 + $0x464] ss:$16 sps:$4 sm:$0xff]  }
  0x78   :  { %1356 = vmatprep.subr.bf16.mxu0 %v2059_v24  ;;  %1520 = vmatprep.subr.bf16.mxu1 %v2062_v25  ;;  %v2147_v24 = vld [vmem:[#allocation5 + $0x46c] ss:$16 sps:$4 sm:$0xff]   ;;  %v2142_v25 = vld [vmem:[#allocation5 + $0x460] ss:$16 sps:$4 sm:$0xff]  }
  0x7b   :  { %1357 = vmatpush1.bf16.msra.mxu0 %v2057_v26  ;;  %1521 = vmatpush1.bf16.msra.mxu1 %v2060_v27  ;;  %v2145_v26 = vld [vmem:[#allocation5 + $0x468] ss:$16 sps:$4 sm:$0xff]   ;;  %v2150_v27 = vld [vmem:[#allocation5 + $0x484] ss:$16 sps:$4 sm:$0xff]  }
  0x7c   :  { %1358 = vmatprep.subr.bf16.mxu0 %v2065_v28  ;;  %1522 = vmatprep.subr.bf16.mxu1 %v2068_v29  ;;  %v2153_v28 = vld [vmem:[#allocation5 + $0x48c] ss:$16 sps:$4 sm:$0xff]   ;;  %v2148_v29 = vld [vmem:[#allocation5 + $0x480] ss:$16 sps:$4 sm:$0xff]  }
  0x7f   :  { %1359 = vmatpush1.bf16.msra.mxu0 %v2063_v32  ;;  %1523 = vmatpush1.bf16.msra.mxu1 %v2066_v33  ;;  %v2159_v32 = vld [vmem:[#allocation5 + $0x4ac] ss:$16 sps:$4 sm:$0xff]   ;;  %v2154_v33 = vld [vmem:[#allocation5 + $0x4a0] ss:$16 sps:$4 sm:$0xff]  }
  0x80   :  { %1360 = vmatprep.subr.bf16.mxu0 %v2071_v35  ;;  %1524 = vmatprep.subr.bf16.mxu1 %v2074_v36  ;;  %v2162_v35 = vld [vmem:[#allocation5 + $0x4c4] ss:$16 sps:$4 sm:$0xff]   ;;  %v2165_v36 = vld [vmem:[#allocation5 + $0x4cc] ss:$16 sps:$4 sm:$0xff]  }
  0x83   :  { %1361 = vmatpush1.bf16.msra.mxu0 %v2069_v37  ;;  %1525 = vmatpush1.bf16.msra.mxu1 %v2072_v38  ;;  %v2160_v37 = vld [vmem:[#allocation5 + $0x4c0] ss:$16 sps:$4 sm:$0xff]   ;;  %v2163_v38 = vld [vmem:[#allocation5 + $0x4c8] ss:$16 sps:$4 sm:$0xff]  }
  0x84   :  { %1362 = vmatprep.subr.bf16.mxu0 %v2077_v39  ;;  %1526 = vmatprep.subr.bf16.mxu1 %v2080_v40  ;;  %v2168_v39 = vld [vmem:[#allocation5 + $0x4e4] ss:$16 sps:$4 sm:$0xff]   ;;  %v2171_v40 = vld [vmem:[#allocation5 + $0x4ec] ss:$16 sps:$4 sm:$0xff]  }
  0x87   :  { %1363 = vmatpush1.bf16.msra.mxu0 %v2075_v41  ;;  %1527 = vmatpush1.bf16.msra.mxu1 %v2078_v42  ;;  %v2166_v41 = vld [vmem:[#allocation5 + $0x4e0] ss:$16 sps:$4 sm:$0xff]   ;;  %v2169_v42 = vld [vmem:[#allocation5 + $0x4e8] ss:$16 sps:$4 sm:$0xff]  }
  0x88   :  { %1364 = vmatprep.subr.bf16.mxu0 %v2083_v43  ;;  %1528 = vmatprep.subr.bf16.mxu1 %v2086_v44  ;;  %v2174_v43 = vld [vmem:[#allocation5 + $0x504] ss:$16 sps:$4 sm:$0xff]   ;;  %v2177_v44 = vld [vmem:[#allocation5 + $0x50c] ss:$16 sps:$4 sm:$0xff]  }
  0x8b   :  { %1365 = vmatpush1.bf16.msra.mxu0 %v2081_v45  ;;  %1529 = vmatpush1.bf16.msra.mxu1 %v2084_v46  ;;  %v2172_v45 = vld [vmem:[#allocation5 + $0x500] ss:$16 sps:$4 sm:$0xff]   ;;  %v2175_v46 = vld [vmem:[#allocation5 + $0x508] ss:$16 sps:$4 sm:$0xff]  }
  0x8c   :  { %1366 = vmatprep.subr.bf16.mxu0 %v2089_v47  ;;  %1530 = vmatprep.subr.bf16.mxu1 %v2092_v48  ;;  %v2180_v47 = vld [vmem:[#allocation5 + $0x524] ss:$16 sps:$4 sm:$0xff]   ;;  %v2183_v48 = vld [vmem:[#allocation5 + $0x52c] ss:$16 sps:$4 sm:$0xff]  }
  0x8f   :  { %1367 = vmatpush1.bf16.msra.mxu0 %v2087_v49  ;;  %1531 = vmatpush1.bf16.msra.mxu1 %v2090_v50  ;;  %v2178_v49 = vld [vmem:[#allocation5 + $0x520] ss:$16 sps:$4 sm:$0xff]   ;;  %v2181_v50 = vld [vmem:[#allocation5 + $0x528] ss:$16 sps:$4 sm:$0xff]  }
  0x90   :  { %1368 = vmatprep.subr.bf16.mxu0 %v2095_v51  ;;  %1532 = vmatprep.subr.bf16.mxu1 %v2098_v52  ;;  %v2186_v51 = vld [vmem:[#allocation5 + $0x544] ss:$16 sps:$4 sm:$0xff]   ;;  %v2189_v52 = vld [vmem:[#allocation5 + $0x54c] ss:$16 sps:$4 sm:$0xff]  }
  0x93   :  { %1369 = vmatpush1.bf16.msra.mxu0 %v2093_v53  ;;  %1533 = vmatpush1.bf16.msra.mxu1 %v2096_v54  ;;  %v2184_v53 = vld [vmem:[#allocation5 + $0x540] ss:$16 sps:$4 sm:$0xff]   ;;  %v2187_v54 = vld [vmem:[#allocation5 + $0x548] ss:$16 sps:$4 sm:$0xff]  }
  0x94   :  { %1370 = vmatprep.subr.bf16.mxu0 %v2101_v55  ;;  %1534 = vmatprep.subr.bf16.mxu1 %v2104_v56  ;;  %v2192_v55 = vld [vmem:[#allocation5 + $0x564] ss:$16 sps:$4 sm:$0xff]   ;;  %v2195_v56 = vld [vmem:[#allocation5 + $0x56c] ss:$16 sps:$4 sm:$0xff]  }
  0x97   :  { %1371 = vmatpush1.bf16.msra.mxu0 %v2099_v57  ;;  %1535 = vmatpush1.bf16.msra.mxu1 %v2102_v58  ;;  %v2190_v57 = vld [vmem:[#allocation5 + $0x560] ss:$16 sps:$4 sm:$0xff]   ;;  %v2193_v58 = vld [vmem:[#allocation5 + $0x568] ss:$16 sps:$4 sm:$0xff]  }
  0x98   :  { %1372 = vmatprep.subr.bf16.mxu0 %v2107_v59  ;;  %1536 = vmatprep.subr.bf16.mxu1 %v2110_v60  ;;  %v2198_v59 = vld [vmem:[#allocation5 + $0x584] ss:$16 sps:$4 sm:$0xff]   ;;  %v2201_v60 = vld [vmem:[#allocation5 + $0x58c] ss:$16 sps:$4 sm:$0xff]  }
  0x9b   :  { %1373 = vmatpush1.bf16.msra.mxu0 %v2105_v61  ;;  %1537 = vmatpush1.bf16.msra.mxu1 %v2108_v62  ;;  %v2196_v61 = vld [vmem:[#allocation5 + $0x580] ss:$16 sps:$4 sm:$0xff]   ;;  %v2199_v62 = vld [vmem:[#allocation5 + $0x588] ss:$16 sps:$4 sm:$0xff]  }
  0x9c   :  { %1374 = vmatprep.subr.bf16.mxu0 %v2113_v63  ;;  %1538 = vmatprep.subr.bf16.mxu1 %v2116_v0  ;;  %v2204_v63 = vld [vmem:[#allocation5 + $0x5a4] ss:$16 sps:$4 sm:$0xff]   ;;  %v2207_v0 = vld [vmem:[#allocation5 + $0x5ac] ss:$16 sps:$4 sm:$0xff]  }
  0x9f   :  { %1375 = vmatpush1.bf16.msra.mxu0 %v2111_v1  ;;  %1539 = vmatpush1.bf16.msra.mxu1 %v2114_v2  ;;  %v2202_v1 = vld [vmem:[#allocation5 + $0x5a0] ss:$16 sps:$4 sm:$0xff]   ;;  %v2205_v2 = vld [vmem:[#allocation5 + $0x5a8] ss:$16 sps:$4 sm:$0xff]  }
  0xa0   :  { %1376 = vmatprep.subr.bf16.mxu0 %v2119_v3  ;;  %1540 = vmatprep.subr.bf16.mxu1 %v2122_v4  ;;  %v2210_v3 = vld [vmem:[#allocation5 + $0x5c4] ss:$16 sps:$4 sm:$0xff]   ;;  %v2213_v4 = vld [vmem:[#allocation5 + $0x5cc] ss:$16 sps:$4 sm:$0xff]  }
  0xa3   :  { %1377 = vmatpush1.bf16.msra.mxu0 %v2117_v5  ;;  %1541 = vmatpush1.bf16.msra.mxu1 %v2120_v6  ;;  %v2208_v5 = vld [vmem:[#allocation5 + $0x5c0] ss:$16 sps:$4 sm:$0xff]   ;;  %v2211_v6 = vld [vmem:[#allocation5 + $0x5c8] ss:$16 sps:$4 sm:$0xff]  }
  0xa4   :  { %1387 = vmatprep.subr.bf16.mxu0 %v2126_v7  ;;  %1551 = vmatprep.subr.bf16.mxu1 %v2129_v8  ;;  %v2216_v7 = vld [vmem:[#allocation5 + $0x5e4] ss:$16 sps:$4 sm:$0xff]   ;;  %v2219_v8 = vld [vmem:[#allocation5 + $0x5ec] ss:$16 sps:$4 sm:$0xff]  }
  0xa6   :  { %1379 = vmatmul.mubr.bf16.vlgmr.msra.gmra.mrb[0].mxu0 %v66_v9  ;;  %1543 = vmatmul.mubr.bf16.vlgmr.msra.gmra.mrb[0].mxu1 %v66_v9  ;;  %v2214_v9 = vld [vmem:[#allocation5 + $0x5e0] ss:$16 sps:$4 sm:$0xff]  }
  0xa7   :  { %1388 = vmatpush1.bf16.msra.mxu0 %v2124_v10  ;;  %1552 = vmatpush1.bf16.msra.mxu1 %v2127_v11  ;;  %v2217_v10 = vld [vmem:[#allocation5 + $0x5e8] ss:$16 sps:$4 sm:$0xff]   ;;  %v2223_v11 = vld [vmem:[#allocation5 + $0x604] ss:$16 sps:$4 sm:$0xff]  }
  0xa8   :  { %1389 = vmatprep.subr.bf16.mxu0 %v2132_v12  ;;  %1553 = vmatprep.subr.bf16.mxu1 %v2135_v14  ;;  %v2226_v12 = vld [vmem:[#allocation5 + $0x60c] ss:$16 sps:$4 sm:$0xff]   ;;  %v68_v14 = vpack.c.bf16 %v2357_v13, %v2357_v13  ;;  %v2289_v13 = vmov 0  }
  0xa9   :  { %1419 = vmatprep.mubr.bf16.mxu0 %v69_v17  ;;  %1583 = vmatprep.mubr.bf16.mxu1 %v69_v17  ;;  %v2227_v17 = vld [vmem:[#allocation5 + $0x624] ss:$16 sps:$4 sm:$0x1f]  }
  0xab   :  { %1390 = vmatpush1.bf16.msra.mxu0 %v2130_v16  ;;  %1554 = vmatpush1.bf16.msra.mxu1 %v2133_v18  ;;  %v2224_v16 = vld [vmem:[#allocation5 + $0x608] ss:$16 sps:$4 sm:$0xff]   ;;  %v2229_v18 = vld [vmem:[#allocation5 + $0x620] ss:$16 sps:$4 sm:$0x1f]  }
  0xac   :  { %1391 = vmatprep.subr.bf16.mxu0 %v2138_v19  ;;  %1555 = vmatprep.subr.bf16.mxu1 %v2141_v20  ;;  %v2230_v19 = vld [vmem:[#allocation5 + $0x62c] ss:$16 sps:$4 sm:$0x1f]   ;;  %v2232_v20 = vld [vmem:[#allocation5 + $0x628] ss:$16 sps:$4 sm:$0x1f]  }
  0xaf   :  { %1392 = vmatpush1.bf16.msra.mxu0 %v2136_v21  ;;  %1556 = vmatpush1.bf16.msra.mxu1 %v2139_v22  ;;  %v1294_v21 = vsel %vm1292_vm0, %v2229_v18, 0  ;;  %v1300_v22 = vsel %vm1292_vm0, %v2232_v20, 0 }
  0xb0   :  { %1393 = vmatprep.subr.bf16.mxu0 %v2144_v23  ;;  %1557 = vmatprep.subr.bf16.mxu1 %v2147_v24  ;;  %v54_v23 = vld [vmem:[#allocation3 + $0x18] sm:$0xf] }
  0xb1   :  { %v70_v24 = vpack.c.bf16 %v54_v23, %v54_v23 }
  0xb3   :  { %1394 = vmatpush1.bf16.msra.mxu0 %v2142_v25  ;;  %1558 = vmatpush1.bf16.msra.mxu1 %v2145_v26  ;;  %v272_v25 = vlaneseq }
  0xb4   :  { %1395 = vmatprep.subr.bf16.mxu0 %v2150_v27  ;;  %1559 = vmatprep.subr.bf16.mxu1 %v2153_v28 }
  0xb5   :  { %v273_v26 = vshrl.u32 %v272_v25, 7 }
  0xb7   :  { %1396 = vmatpush1.bf16.msra.mxu0 %v2148_v29  ;;  %1560 = vmatpush1.bf16.msra.mxu1 %v2151_v30  ;;  %v274_v27 = vsub.s32 0, %v273_v26  ;;  %v282_v28 = vsub.s32 2, %v273_v26  ;;  %v48_v29 = vld [vmem:[%s2377_s2] sm:$0xf]  ;;  %v278_v30 = vsub.s32 1, %v273_v26 }
  0xb8   :  { %1397 = vmatprep.subr.bf16.mxu0 %v2156_v31  ;;  %1561 = vmatprep.subr.bf16.mxu1 %v2159_v32  ;;  %v286_v31 = vsub.s32 3, %v273_v26 }
  0xb9   :  { %v275_v32 = vrot.slane %v48_v29, %v274_v27 }
  0xbb   :  { %1398 = vmatpush1.bf16.msra.mxu0 %v2154_v33  ;;  %1562 = vmatpush1.bf16.msra.mxu1 %v2157_v34  ;;  %v283_v33 = vrot.slane %v48_v29, %v282_v28  ;;  %v279_v34 = vrot.slane %v48_v29, %v278_v30 }
  0xbc   :  { %1399 = vmatprep.subr.bf16.mxu0 %v2162_v35  ;;  %1563 = vmatprep.subr.bf16.mxu1 %v2165_v36  ;;  %v287_v35 = vrot.slane %v48_v29, %v286_v31  ;;  %v49_v36 = vld [vmem:[%s2378_s3] sm:$0xf] }
  0xbf   :  { %1400 = vmatpush1.bf16.msra.mxu0 %v2160_v37  ;;  %1564 = vmatpush1.bf16.msra.mxu1 %v2163_v38 }
  0xc0   :  { %1401 = vmatprep.subr.bf16.mxu0 %v2168_v39  ;;  %1565 = vmatprep.subr.bf16.mxu1 %v2171_v40 }
  0xc3   :  { %1402 = vmatpush1.bf16.msra.mxu0 %v2166_v41  ;;  %1566 = vmatpush1.bf16.msra.mxu1 %v2169_v42 }
  0xc4   :  { %1403 = vmatprep.subr.bf16.mxu0 %v2174_v43  ;;  %1567 = vmatprep.subr.bf16.mxu1 %v2177_v44 }
  0xc7   :  { %1404 = vmatpush1.bf16.msra.mxu0 %v2172_v45  ;;  %1568 = vmatpush1.bf16.msra.mxu1 %v2175_v46 }
  0xc8   :  { %1405 = vmatprep.subr.bf16.mxu0 %v2180_v47  ;;  %1569 = vmatprep.subr.bf16.mxu1 %v2183_v48  ;;  %v1645_v48 = vrot.slane %v49_v36, %v274_v27 }
  0xcb   :  { %1406 = vmatpush1.bf16.msra.mxu0 %v2178_v49  ;;  %1570 = vmatpush1.bf16.msra.mxu1 %v2181_v50 }
  0xcc   :  { %1407 = vmatprep.subr.bf16.mxu0 %v2186_v51  ;;  %1571 = vmatprep.subr.bf16.mxu1 %v2189_v52  ;;  %v1653_v52 = vrot.slane %v49_v36, %v282_v28 }
  0xcf   :  { %1408 = vmatpush1.bf16.msra.mxu0 %v2184_v53  ;;  %1572 = vmatpush1.bf16.msra.mxu1 %v2187_v54  ;;  %v1649_v54 = vrot.slane %v49_v36, %v278_v30 }
  0xd0   :  { %1409 = vmatprep.subr.bf16.mxu0 %v2192_v55  ;;  %1573 = vmatprep.subr.bf16.mxu1 %v2195_v56 }
  0xd3   :  { %1410 = vmatpush1.bf16.msra.mxu0 %v2190_v57  ;;  %1574 = vmatpush1.bf16.msra.mxu1 %v2193_v58 }
  0xd4   :  { %1411 = vmatprep.subr.bf16.mxu0 %v2198_v59  ;;  %1575 = vmatprep.subr.bf16.mxu1 %v2201_v60  ;;  %v1657_v60 = vrot.slane %v49_v36, %v286_v31 }
  0xd7   :  { %1412 = vmatpush1.bf16.msra.mxu0 %v2196_v61  ;;  %1576 = vmatpush1.bf16.msra.mxu1 %v2199_v62 }
  0xd8   :  { %1413 = vmatprep.subr.bf16.mxu0 %v2204_v63  ;;  %1577 = vmatprep.subr.bf16.mxu1 %v2207_v0 }
  0xdb   :  { %1414 = vmatpush1.bf16.msra.mxu0 %v2202_v1  ;;  %1578 = vmatpush1.bf16.msra.mxu1 %v2205_v2 }
  0xdc   :  { %1415 = vmatprep.subr.bf16.mxu0 %v2210_v3  ;;  %1579 = vmatprep.subr.bf16.mxu1 %v2213_v4 }
  0xdf   :  { %1416 = vmatpush1.bf16.msra.mxu0 %v2208_v5  ;;  %1580 = vmatpush1.bf16.msra.mxu1 %v2211_v6 }
  0xe0   :  { %1417 = vmatprep.subr.bf16.mxu0 %v2216_v7  ;;  %1581 = vmatprep.subr.bf16.mxu1 %v2219_v8  ;;  %v1676_v8 = vstv %s2379_s4 }
  0xe3   :  { %1418 = vmatpush1.bf16.msra.mxu0 %v2214_v9  ;;  %1582 = vmatpush1.bf16.msra.mxu1 %v2217_v10 }
  0xe4   :  { %1428 = vmatprep.subr.bf16.mxu0 %v2223_v11  ;;  %1592 = vmatprep.subr.bf16.mxu1 %v2226_v12 }
  0xe6   :  { %1420 = vmatmul.mubr.bf16.vlgmr.msra.gmra.mrb[0].mxu0 %v68_v14  ;;  %1584 = vmatmul.mubr.bf16.vlgmr.msra.gmra.mrb[0].mxu1 %v68_v14 }
  0xe7   :  { %1429 = vmatpush1.bf16.msra.mxu0 %v2221_v15  ;;  %1593 = vmatpush1.bf16.msra.mxu1 %v2224_v16 }
  0xe8   :  { %1892 = vmatprep.subr.msk.bf16.mxu0 %vm1292_vm0, %v2227_v17  ;;  %1894 = vmatprep.subr.msk.bf16.mxu1 %vm1292_vm0, %v2230_v19 }
  0xe9   :  { %1460 = vmatprep.mubr.bf16.mxu0 %v2289_v13  ;;  %1624 = vmatprep.mubr.bf16.mxu1 %v2289_v13 }
  0xeb   :  { %1431 = vmatpush1.bf16.msra.mxu0 %v1294_v21  ;;  %1595 = vmatpush1.bf16.msra.mxu1 %v1300_v22 }
  0xf2   :  { %1893 = vmatmul.mubr.msk.bf16.vlgmr.msra.gmra.mrb[0].mxu0 %vm1288_vm1, %v70_v24  ;;  %1895 = vmatmul.mubr.msk.bf16.vlgmr.msra.gmra.mrb[0].mxu1 %vm1288_vm1, %v70_v24 }
 0x1c5   :  { %v1462_v37 = vpop.f32.mrb[0].mxu0  ;;  %v1626_v38 = vpop.f32.mrb[0].mxu1 }
 0x1c6   :  { %v1897_v39 = vadd.f32 %v1462_v37, %v275_v32  ;;  %v1899_v40 = vadd.f32 %v1626_v38, %v283_v33  ;;  %v1464_v41 = vpop.f32.mrb[1].mxu0  ;;  %v1628_v42 = vpop.f32.mrb[1].mxu1 }
 0x1c7   :  { %v1898_v43 = vadd.f32 %v1464_v41, %v279_v34  ;;  %v1900_v44 = vadd.f32 %v1628_v42, %v287_v35  ;;  %v1466_v45 = vpop.f32.mrb[2].mxu0  ;;  %v1630_v46 = vpop.f32.mrb[2].mxu1 }
 0x1c8   :  { %v1633_v47 = vmul.f32 0.2, %v1897_v39  ;;  %v1635_v49 = vmul.f32 0.2, %v1899_v40  ;;  %v1467_v50 = vpop.f32.mrb[3].mxu0  ;;  %v1631_v51 = vpop.f32.mrb[3].mxu1 }
 0x1c9   :  { %v1634_v53 = vmul.f32 0.2, %v1898_v43  ;;  %v1636_v55 = vmul.f32 0.2, %v1900_v44 }
 0x1ca   :  { %v1637_v56 = vmax.f32 %v1897_v39, %v1633_v47  ;;  %v1639_v57 = vmax.f32 %v1899_v40, %v1635_v49 }
 0x1cb   :  { %v1638_v58 = vmax.f32 %v1898_v43, %v1634_v53  ;;  %v1640_v59 = vmax.f32 %v1900_v44, %v1636_v55 }
 0x1cc   :  { %v1662_v61 = vmul.f32 %v1645_v48, %v1637_v56  ;;  %v1664_v62 = vmul.f32 %v1653_v52, %v1639_v57 }
 0x1cd   :  { %v1663_v63 = vmul.f32 %v1649_v54, %v1638_v58  ;;  %v1665_v1 = vmul.f32 %v1657_v60, %v1640_v59 }
 0x1ce   :  { %v1667_v0 = vsel %vm1666_vm2, %v1662_v61, 0.0  ;;  %v1670_v4 = vsel %vm1666_vm2, %v1664_v62, 0.0 }
 0x1cf   :  { %v1668_v2 = vsel %vm1666_vm2, %v1663_v63, 0.0  ;;  %v1672_v6 = vsel %vm1666_vm2, %v1665_v1, 0.0 }
 0x1d0   :  { %v1669_v3 = vadd.f32 %v1668_v2, %v1667_v0 }
 0x1d2   :  { %v1671_v5 = vadd.f32 %v1670_v4, %v1669_v3 }
 0x1d4   :  { %v1673_v7 = vadd.f32 %v1672_v6, %v1671_v5 }
 0x1d6   :  { %1674 = vadd.xlane.f32.xlu0 %v1673_v7 }
 0x263   :  { %v1675_v9 = vpop.xlane.xlu0 %1674 }
 0x264   :  { %v1677_v10 = vadd.f32 %v1676_v8, %v1675_v9 }
 0x266   :  { %v1896_v11 = vmul.f32 -1.442695, %v1677_v10 }
 0x268   :  { %2233 = vpow2.f32 %v1896_v11 }
 0x272   :  { %v2234_v12 = vpop.eup %2233 }
 0x273   :  { %v1681_v14 = vadd.f32 1.0, %v2234_v12 }
 0x275   :  { %2235 = vrcp.f32 %v1681_v14 }
 0x27f   :  { %v2236_v15 = vpop.eup %2235 }
 0x280   :  { %1685 = vst.msk [vmem:[%s2380_s5] sm:$0xf] %vm1684_vm3, %v2236_v15 }
 0x281   :  { %1690 = vsyncpa [#allocation4], 1 }
 0x282   :  { %1691 = vsyncpa [#allocation6], 1 }

</bundles_post_ra>
